<compile_context>
chip_gen: v6e
topology: v6e:2x2x1
jax: 0.10.0
libtpu: 0.0.40
codegen_flags: <defaults>
</compile_context>

<pallas_src>
import functools

import jax
import jax.numpy as jnp
import numpy as np
from jax.experimental import pallas as pl
from jax.experimental.pallas import tpu as pltpu


def conv_lstm_cell_kernel(patches_ref, wT_ref, b_ref, c_ref,
                          h_out_ref, c_out_ref, *, Ch):
    """One batch element per grid step.

    patches_ref : (1, K*K*C_tot, H*W)  im2col'd, zero-padded concat([x, h])
    wT_ref      : (4*Ch, K*K*C_tot)    conv weight, (tap, channel) column order
    b_ref       : (4*Ch, 1)            conv bias (broadcast along lanes)
    c_ref       : (1, Ch, H*W)         previous cell state
    h_out_ref   : (1, Ch, H*W)         new hidden state
    c_out_ref   : (1, Ch, H*W)         new cell state (aliased with c input)
    """
    # Single lane-dense MXU matmul: gates^T has shape (4*Ch, H*W).
    gates = jnp.dot(wT_ref[...], patches_ref[0],
                    preferred_element_type=jnp.float32) + b_ref[...]

    # Gate views: sublane-aligned slices (multiples of Ch=8 along sublanes).
    ingate     = jax.nn.sigmoid(gates[0 * Ch:1 * Ch, :])
    forgetgate = jax.nn.sigmoid(gates[1 * Ch:2 * Ch, :])
    cellgate   = jnp.tanh(gates[2 * Ch:3 * Ch, :])
    outgate    = jax.nn.sigmoid(gates[3 * Ch:4 * Ch, :])

    c_prev = c_ref[0].astype(jnp.float32)
    c_new = c_prev * forgetgate + ingate * cellgate
    h_new = outgate * jnp.tanh(c_new)

    h_out_ref[0] = h_new.astype(h_out_ref.dtype)
    c_out_ref[0] = c_new.astype(c_out_ref.dtype)


@functools.partial(jax.jit, static_argnames=("kernel_size",))
def conv_lstm_cell(x, h, c, weight, bias, *, kernel_size):
    """ConvLSTMCell forward (NCHW activations, OIHW weight, like PyTorch).

    x : (N, Cin, H, W)   h, c : (N, Ch, H, W)
    weight : (4*Ch, Cin+Ch, K, K)   bias : (4*Ch,)
    Returns (h_new, c_new), each (N, Ch, H, W).
    """
    N, Cin, H, W = x.shape
    Ch = h.shape[1]
    K = kernel_size
    pad = K // 2
    C_tot = Cin + Ch
    HW = H * W
    KKC = K * K * C_tot

    # ---- wrapper-side im2col (plain JAX glue) -----------------------------
    combined = jnp.concatenate([x, h], axis=1)                     # (N,C_tot,H,W)
    comb_p = jnp.pad(combined,
                     ((0, 0), (0, 0), (pad, pad), (pad, pad)))     # (N,C_tot,Hp,Wp)
    taps = [comb_p[:, :, ky:ky + H, kx:kx + W]
            for ky in range(K) for kx in range(K)]                 # K*K x (N,C_tot,H,W)
    patches = jnp.stack(taps, axis=1).reshape(N, KKC, HW)          # (N, K*K*C_tot, H*W)

    # OIHW -> (4*Ch, ky, kx, c) -> (4*Ch, K*K*C_tot): matches patch row order
    w_mat = jnp.transpose(weight, (0, 2, 3, 1)).reshape(4 * Ch, KKC)
    b_col = bias.reshape(4 * Ch, 1)
    c_flat = c.reshape(N, Ch, HW)

    kernel = functools.partial(conv_lstm_cell_kernel, Ch=Ch)

    h_new, c_new = pl.pallas_call(
        kernel,
        out_shape=(jax.ShapeDtypeStruct((N, Ch, HW), x.dtype),
                   jax.ShapeDtypeStruct((N, Ch, HW), x.dtype)),
        grid_spec=pltpu.PrefetchScalarGridSpec(
            num_scalar_prefetch=0,
            grid=(N,),
            in_specs=[
                pl.BlockSpec((1, KKC, HW), lambda n: (n, 0, 0)),
                pl.BlockSpec((4 * Ch, KKC), lambda n: (0, 0)),
                pl.BlockSpec((4 * Ch, 1), lambda n: (0, 0)),
                pl.BlockSpec((1, Ch, HW), lambda n: (n, 0, 0)),
            ],
            out_specs=[
                pl.BlockSpec((1, Ch, HW), lambda n: (n, 0, 0)),
                pl.BlockSpec((1, Ch, HW), lambda n: (n, 0, 0)),
            ],
        ),
        # reuse the previous-cell-state buffer for the new cell state
        input_output_aliases={3: 1},
        compiler_params=pltpu.CompilerParams(
            dimension_semantics=("parallel",)),
    )(patches, w_mat, b_col, c_flat)

    return h_new.reshape(N, Ch, H, W), c_new.reshape(N, Ch, H, W)


def _reference(x, h, c, weight, bias):
    """Pure-JAX NCHW/OIHW reference mirroring the PyTorch module."""
    K = weight.shape[-1]
    pad = K // 2
    combined = jnp.concatenate([x, h], axis=1)
    gates = jax.lax.conv_general_dilated(
        combined, weight, window_strides=(1, 1),
        padding=((pad, pad), (pad, pad)),
        dimension_numbers=("NCHW", "OIHW", "NCHW")) + bias[None, :, None, None]
    Ch = h.shape[1]
    i = jax.nn.sigmoid(gates[:, 0 * Ch:1 * Ch])
    f = jax.nn.sigmoid(gates[:, 1 * Ch:2 * Ch])
    g = jnp.tanh(gates[:, 2 * Ch:3 * Ch])
    o = jax.nn.sigmoid(gates[:, 3 * Ch:4 * Ch])
    c_new = c * f + i * g
    h_new = o * jnp.tanh(c_new)
    return h_new, c_new


if __name__ == "__main__":
    # small, forward-consistent shapes (H*W = 256 keeps the lane axis dense)
    N, H, W = 2, 16, 16
    input_channels, hidden_channels, kernel_size = 4, 8, 3

    key = jax.random.PRNGKey(0)
    kx, kh, kc, kw, kb = jax.random.split(key, 5)

    x = jax.random.normal(kx, (N, input_channels, H, W), jnp.float32)
    h0 = jax.random.normal(kh, (N, hidden_channels, H, W), jnp.float32)
    c0 = jax.random.normal(kc, (N, hidden_channels, H, W), jnp.float32)

    # deterministic parameter init (same shapes as nn.Conv2d: OIHW)
    fan_in = (input_channels + hidden_channels) * kernel_size * kernel_size
    bound = 1.0 / np.sqrt(fan_in)
    weight = jax.random.uniform(
        kw, (4 * hidden_channels, input_channels + hidden_channels,
             kernel_size, kernel_size),
        jnp.float32, minval=-bound, maxval=bound)
    bias = jax.random.uniform(kb, (4 * hidden_channels,), jnp.float32,
                              minval=-bound, maxval=bound)

    # reference first (keeps the original c0 untouched by output aliasing)
    h_ref, c_ref = _reference(x, h0, c0, weight, bias)

    h_new, c_new = conv_lstm_cell(x, h0, c0, weight, bias,
                                  kernel_size=kernel_size)
    jax.block_until_ready((h_new, c_new))

    np.testing.assert_allclose(np.asarray(h_new), np.asarray(h_ref),
                               rtol=1e-4, atol=1e-4)
    np.testing.assert_allclose(np.asarray(c_new), np.asarray(c_ref),
                               rtol=1e-4, atol=1e-4)

    print("KERNEL_OK")
</pallas_src>

<mosaic_0001>
module attributes {stable_mosaic.version = 11 : i64} {
  func.func @conv_lstm_cell_kernel(%arg0: i32, %arg1: memref<1x108x256xf32, #tpu.memory_space<vmem>>, %arg2: memref<32x108xf32, #tpu.memory_space<vmem>>, %arg3: memref<32x1xf32, #tpu.memory_space<vmem>>, %arg4: memref<1x8x256xf32, #tpu.memory_space<vmem>>, %arg5: memref<1x8x256xf32, #tpu.memory_space<vmem>>, %arg6: memref<1x8x256xf32, #tpu.memory_space<vmem>>) attributes {dimension_semantics = [#tpu.dimension_semantics<parallel>], iteration_bounds = array<i64: 2>, scalar_prefetch = 0 : i64, scratch_operands = 0 : i64, tpu.core_type = #tpu.core_type<tc>, window_params = [{transform_indices = @transform_0, window_bounds = array<i64: 1, 108, 256>}, {pipeline_mode = #tpu.pipeline_mode<synchronous>, transform_indices = @transform_1, window_bounds = array<i64: 32, 108>}, {pipeline_mode = #tpu.pipeline_mode<synchronous>, transform_indices = @transform_2, window_bounds = array<i64: 32, 1>}, {transform_indices = @transform_3, window_bounds = array<i64: 1, 8, 256>}, {transform_indices = @transform_4, window_bounds = array<i64: 1, 8, 256>}, {transform_indices = @transform_5, window_bounds = array<i64: 1, 8, 256>}]} {
    %c0 = arith.constant 0 : index
    %c0_0 = arith.constant 0 : index
    %0 = vector.load %arg2[%c0, %c0_0] : memref<32x108xf32, #tpu.memory_space<vmem>>, vector<32x108xf32>
    %c0_1 = arith.constant 0 : index
    %c0_2 = arith.constant 0 : index
    %c0_3 = arith.constant 0 : index
    %1 = vector.load %arg1[%c0_1, %c0_2, %c0_3] : memref<1x108x256xf32, #tpu.memory_space<vmem>>, vector<1x108x256xf32>
    %2 = vector.shape_cast %1 : vector<1x108x256xf32> to vector<108x256xf32>
    %cst = arith.constant dense<0.000000e+00> : vector<32x256xf32>
    %3 = tpu.matmul %0, %2, %cst {dimension_numbers = #tpu.dot_dimension_numbers<[1], [0], [0], [1], [0, 0, 1, 1], [], []>} : vector<32x108xf32>, vector<108x256xf32>, vector<32x256xf32> -> vector<32x256xf32>
    %c0_4 = arith.constant 0 : index
    %c0_5 = arith.constant 0 : index
    %4 = vector.load %arg3[%c0_4, %c0_5] : memref<32x1xf32, #tpu.memory_space<vmem>>, vector<32x1xf32>
    %5 = vector.broadcast %4 : vector<32x1xf32> to vector<32x256xf32>
    %6 = arith.addf %3, %5 : vector<32x256xf32>
    %7 = vector.extract_strided_slice %6 {offsets = [0, 0], sizes = [8, 256], strides = [1, 1]} : vector<32x256xf32> to vector<8x256xf32>
    %8 = arith.negf %7 : vector<8x256xf32>
    %9 = math.exp %8 : vector<8x256xf32>
    %cst_6 = arith.constant 1.000000e+00 : f32
    %10 = vector.broadcast %cst_6 : f32 to vector<8x256xf32>
    %11 = arith.addf %10, %9 : vector<8x256xf32>
    %12 = arith.divf %10, %11 : vector<8x256xf32>
    %13 = vector.extract_strided_slice %6 {offsets = [8, 0], sizes = [8, 256], strides = [1, 1]} : vector<32x256xf32> to vector<8x256xf32>
    %14 = arith.negf %13 : vector<8x256xf32>
    %15 = math.exp %14 : vector<8x256xf32>
    %cst_7 = arith.constant 1.000000e+00 : f32
    %16 = vector.broadcast %cst_7 : f32 to vector<8x256xf32>
    %17 = arith.addf %16, %15 : vector<8x256xf32>
    %18 = arith.divf %16, %17 : vector<8x256xf32>
    %19 = vector.extract_strided_slice %6 {offsets = [16, 0], sizes = [8, 256], strides = [1, 1]} : vector<32x256xf32> to vector<8x256xf32>
    %20 = math.tanh %19 : vector<8x256xf32>
    %21 = vector.extract_strided_slice %6 {offsets = [24, 0], sizes = [8, 256], strides = [1, 1]} : vector<32x256xf32> to vector<8x256xf32>
    %22 = arith.negf %21 : vector<8x256xf32>
    %23 = math.exp %22 : vector<8x256xf32>
    %cst_8 = arith.constant 1.000000e+00 : f32
    %24 = vector.broadcast %cst_8 : f32 to vector<8x256xf32>
    %25 = arith.addf %24, %23 : vector<8x256xf32>
    %26 = arith.divf %24, %25 : vector<8x256xf32>
    %c0_9 = arith.constant 0 : index
    %c0_10 = arith.constant 0 : index
    %c0_11 = arith.constant 0 : index
    %27 = vector.load %arg4[%c0_9, %c0_10, %c0_11] : memref<1x8x256xf32, #tpu.memory_space<vmem>>, vector<1x8x256xf32>
    %28 = vector.shape_cast %27 : vector<1x8x256xf32> to vector<8x256xf32>
    %29 = arith.mulf %28, %18 : vector<8x256xf32>
    %30 = arith.mulf %12, %20 : vector<8x256xf32>
    %31 = arith.addf %29, %30 : vector<8x256xf32>
    %32 = math.tanh %31 : vector<8x256xf32>
    %33 = arith.mulf %26, %32 : vector<8x256xf32>
    %c0_12 = arith.constant 0 : index
    %c0_13 = arith.constant 0 : index
    %c0_14 = arith.constant 0 : index
    %34 = vector.load %arg5[%c0_12, %c0_13, %c0_14] : memref<1x8x256xf32, #tpu.memory_space<vmem>>, vector<1x8x256xf32>
    %35 = vector.shape_cast %34 : vector<1x8x256xf32> to vector<8x256xf32>
    %36 = vector.shape_cast %33 : vector<8x256xf32> to vector<1x8x256xf32>
    tpu.vector_store %arg5[%c0_12, %c0_13, %c0_14], %36 {strides = array<i32>} : memref<1x8x256xf32, #tpu.memory_space<vmem>>, vector<1x8x256xf32>,
    %c0_15 = arith.constant 0 : index
    %c0_16 = arith.constant 0 : index
    %c0_17 = arith.constant 0 : index
    %37 = vector.load %arg6[%c0_15, %c0_16, %c0_17] : memref<1x8x256xf32, #tpu.memory_space<vmem>>, vector<1x8x256xf32>
    %38 = vector.shape_cast %37 : vector<1x8x256xf32> to vector<8x256xf32>
    %39 = vector.shape_cast %31 : vector<8x256xf32> to vector<1x8x256xf32>
    tpu.vector_store %arg6[%c0_15, %c0_16, %c0_17], %39 {strides = array<i32>} : memref<1x8x256xf32, #tpu.memory_space<vmem>>, vector<1x8x256xf32>,
    return
  }
  func.func @transform_0(%arg0: i32) -> (i32, i32, i32) {
    %c0_i32 = arith.constant 0 : i32
    %c0_i32_0 = arith.constant 0 : i32
    %c0_i32_1 = arith.constant 0 : i32
    return %arg0, %c0_i32, %c0_i32_0 : i32, i32, i32
  }
  func.func @transform_1(%arg0: i32) -> (i32, i32) {
    %c0_i32 = arith.constant 0 : i32
    %c0_i32_0 = arith.constant 0 : i32
    %c0_i32_1 = arith.constant 0 : i32
    return %c0_i32, %c0_i32_0 : i32, i32
  }
  func.func @transform_2(%arg0: i32) -> (i32, i32) {
    %c0_i32 = arith.constant 0 : i32
    %c0_i32_0 = arith.constant 0 : i32
    %c0_i32_1 = arith.constant 0 : i32
    return %c0_i32, %c0_i32_0 : i32, i32
  }
  func.func @transform_3(%arg0: i32) -> (i32, i32, i32) {
    %c0_i32 = arith.constant 0 : i32
    %c0_i32_0 = arith.constant 0 : i32
    %c0_i32_1 = arith.constant 0 : i32
    return %arg0, %c0_i32, %c0_i32_0 : i32, i32, i32
  }
  func.func @transform_4(%arg0: i32) -> (i32, i32, i32) {
    %c0_i32 = arith.constant 0 : i32
    %c0_i32_0 = arith.constant 0 : i32
    %c0_i32_1 = arith.constant 0 : i32
    return %arg0, %c0_i32, %c0_i32_0 : i32, i32, i32
  }
  func.func @transform_5(%arg0: i32) -> (i32, i32, i32) {
    %c0_i32 = arith.constant 0 : i32
    %c0_i32_0 = arith.constant 0 : i32
    %c0_i32_1 = arith.constant 0 : i32
    return %arg0, %c0_i32, %c0_i32_0 : i32, i32, i32
  }
}

</mosaic_0001>

<bundles_post_ra>
// kernel: conv_lstm_cell.1
= control target key start
LH: loop header
LB: loop body
LE: loop exit
PB: predicated region body
PF: predicated region fallthrough
CT: control target
= control target key end

     0   :  { %s719_s18 = smov 0   ;;  %s809_s0 = inlined_call_operand.vmem [shape: f32[2,108,256], index: 0, kind: input, shape index: {}]   ;;  %s810_s1 = inlined_call_operand.vmem [shape: f32[32,108], index: 1, kind: input, shape index: {}]   ;;  %s811_s2 = inlined_call_operand.vmem [shape: f32[32,1], index: 2, kind: input, shape index: {}]   ;;  %s812_s3 = inlined_call_operand.vmem [shape: f32[2,8,256], index: 3, kind: input, shape index: {}, may-alias: {3,5}]   ;;  %s813_s4 = inlined_call_operand.vmem [shape: f32[2,8,256], index: 4, kind: output, shape index: {0}]   ;;  %s814_s5 = inlined_call_operand.vmem [shape: f32[2,8,256], index: 5, kind: output, shape index: {1}, may-alias: {3,5}]  }
   0x1 LB: > { %s577_s19 = sadd.s32 4294967295, %s685_s18   ;;  %p581_p0 = scmp.ge.s32.totalorder %s685_s18, 1  ;;  %s685_s18 = sphi %s719_s18, %s16_s18  }
   0x2   : > { %p200_p1 = scmp.lt.s32.totalorder %s685_s18, 3 }
   0x4   : > { %p201_p2 = pnand %p581_p0, %p200_p1 }
   0x5   : > { %p238_p3 = scmp.lt.s32.totalorder (!%p201_p2), %s577_s19, 1 }
   0x6   : > { %204 = sbr.rel (%p201_p2) target bundleno = 299 (0x12b), region = 36 }
   0xb   : > { %v687_v0 = vmov 0.0   ;;  %v290_v1 = vld [vmem:[%s811_s2] sm:$0xff]  ;;  %s816_s19 = smov (!%p238_p3, %s577_s19), 1  ;;  %v688_v2 = vmov 0   ;;  %v292_v3 = vld [vmem:[%s811_s2 + $0x10] sm:$0xff]  ;;  %v291_v4 = vld [vmem:[%s811_s2 + $0x8] sm:$0xff] }
   0xc   : > { %398 = vmatprep.mubr.f32.mxu0 %v687_v0  ;;  %410 = vmatprep.mubr.f32.mxu1 %v687_v0  ;;  %s634_s24 = smul.u32 224, %s816_s19  ;;  %v293_v5 = vld [vmem:[%s811_s2 + $0x18] sm:$0xff]  ;;  %vm327_vm0 = vcmask 1043456   ;;  %v258_v34 = vld [vmem:[%s810_s1] sm:$0xff]  ;;  %vm314_vm1 = vcmask 883712   ;;  %v260_v35 = vld [vmem:[%s810_s1 + $0x10] sm:$0xff] }
   0xd   : > { %645 = vset.pattern.permute.xlu0 %v688_v2  ;;  %646 = vset.pattern.permute.xlu1 %v688_v2  ;;  %v259_v36 = vld [vmem:[%s810_s1 + $0x8] sm:$0xff]  ;;  %v261_v37 = vld [vmem:[%s810_s1 + $0x18] sm:$0xff]  ;;  %s792_s15 = sshll.u32 %s816_s19, 4 }
   0xe   : > { %296 = vperm.xlu0 %645, %v290_v1   ;;  %306 = vperm.xlu1 %646, %v292_v3   ;;  %s747_s6 = scalar_lea.vmem %s809_s0, %s634_s24  ;;  %s247_s20 = scalar_lea.vmem %s812_s3, %s792_s15 }
   0xf   : > { %v289_v6 = vld [vmem:[%s747_s6 + $0xd8] sm:$0xf]  ;;  %v288_v7 = vld [vmem:[%s747_s6 + $0xd0] sm:$0xf]  ;;  %v287_v8 = vld [vmem:[%s747_s6 + $0xc8] sm:$0xff]  ;;  %s257_s22 = scalar_lea.vmem %s814_s5, %s792_s15  ;;  %s252_s25 = scalar_lea.vmem %s813_s4, %s792_s15 }
  0x10   : > { %589 = vmatprep.subr.msk.mxu0 %vm327_vm0, %v289_v6  ;;  %v286_v9 = vld [vmem:[%s747_s6 + $0xc0] sm:$0xff]  ;;  %606 = vmatprep.subr.msk.mxu1 %vm327_vm0, %v289_v6  ;;  %v285_v10 = vld [vmem:[%s747_s6 + $0xb8] sm:$0xff]  ;;  %v284_v11 = vld [vmem:[%s747_s6 + $0xb0] sm:$0xff] }
  0x11   : > { %590 = vmatpush1.msk.msra.mxu0 %vm327_vm0, %v288_v7  ;;  %620 = vmatpush1.msk.msra.mxu1 %vm327_vm0, %v288_v7  ;;  %v283_v12 = vld [vmem:[%s747_s6 + $0xa8] sm:$0xff]  ;;  %v282_v13 = vld [vmem:[%s747_s6 + $0xa0] sm:$0xff]  ;;  %v281_v14 = vld [vmem:[%s747_s6 + $0x98] sm:$0xff] }
  0x12   : > { %301 = vperm.xlu0 %645, %v291_v4   ;;  %311 = vperm.xlu1 %646, %v293_v5   ;;  %v280_v15 = vld [vmem:[%s747_s6 + $0x90] sm:$0xff]  ;;  %v279_v16 = vld [vmem:[%s747_s6 + $0x88] sm:$0xff]  ;;  %v278_v17 = vld [vmem:[%s747_s6 + $0x80] sm:$0xff] }
  0x13   : > { %340 = vmatprep.subr.mxu0 %v287_v8  ;;  %607 = vmatprep.subr.mxu1 %v287_v8  ;;  %v277_v18 = vld [vmem:[%s747_s6 + $0x78] sm:$0xff]  ;;  %v276_v19 = vld [vmem:[%s747_s6 + $0x70] sm:$0xff]  ;;  %v275_v20 = vld [vmem:[%s747_s6 + $0x68] sm:$0xff] }
  0x14   : > { %341 = vmatpush1.msra.mxu0 %v286_v9  ;;  %621 = vmatpush1.msra.mxu1 %v286_v9  ;;  %v274_v21 = vld [vmem:[%s747_s6 + $0x60] sm:$0xff]  ;;  %v273_v22 = vld [vmem:[%s747_s6 + $0x58] sm:$0xff]  ;;  %v272_v23 = vld [vmem:[%s747_s6 + $0x50] sm:$0xff] }
  0x15   : > { %342 = vmatprep.subr.mxu0 %v285_v10  ;;  %608 = vmatprep.subr.mxu1 %v285_v10  ;;  %v271_v24 = vld [vmem:[%s747_s6 + $0x48] sm:$0xff]  ;;  %v270_v25 = vld [vmem:[%s747_s6 + $0x40] sm:$0xff]  ;;  %v269_v26 = vld [vmem:[%s747_s6 + $0x38] sm:$0xff] }
  0x16   : > { %343 = vmatpush1.msra.mxu0 %v284_v11  ;;  %622 = vmatpush1.msra.mxu1 %v284_v11  ;;  %v268_v27 = vld [vmem:[%s747_s6 + $0x30] sm:$0xff]  ;;  %v267_v28 = vld [vmem:[%s747_s6 + $0x28] sm:$0xff]  ;;  %v266_v29 = vld [vmem:[%s747_s6 + $0x20] sm:$0xff] }
  0x17   : > { %344 = vmatprep.subr.mxu0 %v283_v12  ;;  %609 = vmatprep.subr.mxu1 %v283_v12  ;;  %v265_v30 = vld [vmem:[%s747_s6 + $0x18] sm:$0xff]  ;;  %v264_v31 = vld [vmem:[%s747_s6 + $0x10] sm:$0xff]  ;;  %v263_v32 = vld [vmem:[%s747_s6 + $0x8] sm:$0xff] }
  0x18   : > { %345 = vmatpush1.msra.mxu0 %v282_v13  ;;  %623 = vmatpush1.msra.mxu1 %v282_v13  ;;  %v262_v33 = vld [vmem:[%s747_s6] sm:$0xff] }
  0x19   : > { %346 = vmatprep.subr.mxu0 %v281_v14  ;;  %610 = vmatprep.subr.mxu1 %v281_v14  ;;  %v461_v12 = vld [vmem:[%s247_s20] sm:$0xff] }
  0x1a   : > { %347 = vmatpush1.msra.mxu0 %v280_v15  ;;  %624 = vmatpush1.msra.mxu1 %v280_v15  ;;  %v462_v15 = vld [vmem:[%s247_s20 + $0x8] sm:$0xff] }
  0x1b   : > { %348 = vmatprep.subr.mxu0 %v279_v16  ;;  %611 = vmatprep.subr.mxu1 %v279_v16 }
  0x1c   : > { %349 = vmatpush1.msra.mxu0 %v278_v17  ;;  %625 = vmatpush1.msra.mxu1 %v278_v17 }
  0x1d   : > { %350 = vmatprep.subr.mxu0 %v277_v18  ;;  %612 = vmatprep.subr.mxu1 %v277_v18 }
  0x1e   : > { %351 = vmatpush1.msra.mxu0 %v276_v19  ;;  %626 = vmatpush1.msra.mxu1 %v276_v19 }
  0x1f   : > { %352 = vmatprep.subr.mxu0 %v275_v20  ;;  %613 = vmatprep.subr.mxu1 %v275_v20 }
  0x20   : > { %353 = vmatpush1.msra.mxu0 %v274_v21  ;;  %627 = vmatpush1.msra.mxu1 %v274_v21 }
  0x21   : > { %354 = vmatprep.subr.mxu0 %v273_v22  ;;  %614 = vmatprep.subr.mxu1 %v273_v22 }
  0x22   : > { %355 = vmatpush1.msra.mxu0 %v272_v23  ;;  %628 = vmatpush1.msra.mxu1 %v272_v23 }
  0x23   : > { %356 = vmatprep.subr.mxu0 %v271_v24  ;;  %615 = vmatprep.subr.mxu1 %v271_v24 }
  0x24   : > { %357 = vmatpush1.msra.mxu0 %v270_v25  ;;  %629 = vmatpush1.msra.mxu1 %v270_v25 }
  0x25   : > { %358 = vmatprep.subr.mxu0 %v269_v26  ;;  %616 = vmatprep.subr.mxu1 %v269_v26 }
  0x26   : > { %359 = vmatpush1.msra.mxu0 %v268_v27  ;;  %630 = vmatpush1.msra.mxu1 %v268_v27 }
  0x27   : > { %360 = vmatprep.subr.mxu0 %v267_v28  ;;  %617 = vmatprep.subr.mxu1 %v267_v28 }
  0x28   : > { %361 = vmatpush1.msra.mxu0 %v266_v29  ;;  %631 = vmatpush1.msra.mxu1 %v266_v29 }
  0x29   : > { %362 = vmatprep.subr.mxu0 %v265_v30  ;;  %618 = vmatprep.subr.mxu1 %v265_v30 }
  0x2a   : > { %363 = vmatpush1.msra.mxu0 %v264_v31  ;;  %632 = vmatpush1.msra.mxu1 %v264_v31 }
  0x2b   : > { %364 = vmatprep.subr.mxu0 %v263_v32  ;;  %619 = vmatprep.subr.mxu1 %v263_v32 }
  0x2c   : > { %365 = vmatpush1.msra.mxu0 %v262_v33  ;;  %633 = vmatpush1.msra.mxu1 %v262_v33 }
  0x2d   : > { %591 = vmatmul.mubr.msk.f32.vlgmr.msra.gmra.mxu0 %vm314_vm1, %v258_v34  ;;  %593 = vmatmul.mubr.msk.f32.vlgmr.msra.gmra.mxu1 %vm314_vm1, %v260_v35 }
  0x2e   : > { %404 = vmatprep.mubr.f32.mxu0 %v687_v0  ;;  %416 = vmatprep.mubr.f32.mxu1 %v687_v0 }
  0x31   : > { %592 = vmatmul.mubr.msk.f32.gmra.mxu0 %vm314_vm1, %v259_v36  ;;  %594 = vmatmul.mubr.msk.f32.gmra.mxu1 %vm314_vm1, %v261_v37 }
  0x89   : > { %v297_v38 = vpop.permute.xlu0 %296  ;;  %v307_v45 = vpop.permute.xlu1 %306 }
  0x8d   : > { %v302_v47 = vpop.permute.xlu0 %301  ;;  %v312_v56 = vpop.permute.xlu1 %311 }
  0xed   : > { %v400_v39 = vpop.f32.mrf.mxu0  ;;  %v412_v40 = vpop.f32.mrf.mxu1 }
  0xee   : > { %v401_v41 = vadd.f32 %v400_v39, %v297_v38  ;;  %v413_v60 = vadd.f32 %v412_v40, %v307_v45 }
  0xef   : > { %v402_v42 = vpop.f32.mrf.mxu0  ;;  %v414_v46 = vpop.f32.mrf.mxu1 }
  0xf0   : > { %v595_v43 = vmul.f32 -1.442695, %v401_v41  ;;  %v403_v44 = vadd.f32 %v402_v42, %v297_v38  ;;  %v415_v4 = vadd.f32 %v414_v46, %v307_v45 }
  0xf1   : > { %v406_v48 = vpop.f32.mrf.mxu0  ;;  %v418_v54 = vpop.f32.mrf.mxu1 }
  0xf2   : > { %647 = vpow2.f32 %v595_v43  ;;  %v596_v49 = vmul.f32 -1.442695, %v403_v44  ;;  %v407_v50 = vadd.f32 %v406_v48, %v302_v47  ;;  %v419_v58 = vadd.f32 %v418_v54, %v312_v56 }
  0xf3   : > { %v408_v51 = vpop.f32.mrf.mxu0  ;;  %v420_v57 = vpop.f32.mrf.mxu1 }
  0xf4   : > { %649 = vpow2.f32 %v596_v49  ;;  %v597_v52 = vmul.f32 -1.442695, %v407_v50  ;;  %v409_v53 = vadd.f32 %v408_v51, %v302_v47  ;;  %v421_v59 = vadd.f32 %v420_v57, %v312_v56 }
  0xf5   : > { %v599_v61 = vmul.f32 -1.442695, %v419_v58 }
  0xf6   : > { %651 = vpow2.f32 %v597_v52  ;;  %v598_v55 = vmul.f32 -1.442695, %v409_v53  ;;  %v600_v63 = vmul.f32 -1.442695, %v421_v59 }
  0xf8   : > { %653 = vpow2.f32 %v598_v55 }
  0xf9   : > { %655 = vtanh.f32 %v413_v60 }
  0xfa   : > { %657 = vpow2.f32 %v599_v61 }
  0xfb   : > { %659 = vpow2.f32 %v600_v63 }
  0xff   : > { %v648_v62 = vpop.eup %647 }
 0x100   : > { %v429_v0 = vadd.f32 1.0, %v648_v62 }
 0x101   : > { %v650_v1 = vpop.eup %649 }
 0x102   : > { %v430_v2 = vadd.f32 1.0, %v650_v1  ;;  %661 = vrcp.f32 %v429_v0 }
 0x103   : > { %v652_v3 = vpop.eup %651 }
 0x104   : > { %v441_v5 = vadd.f32 1.0, %v652_v3  ;;  %663 = vrcp.f32 %v430_v2 }
 0x105   : > { %v654_v6 = vpop.eup %653 }
 0x106   : > { %665 = vrcp.f32 %v441_v5  ;;  %v442_v7 = vadd.f32 1.0, %v654_v6  ;;  %v656_v8 = vpop.eup %655 }
 0x107   : > { %667 = vtanh.f32 %v415_v4  ;;  %v658_v9 = vpop.eup %657 }
 0x108   : > { %669 = vrcp.f32 %v442_v7  ;;  %v660_v10 = vpop.eup %659  ;;  %v455_v16 = vadd.f32 1.0, %v658_v9 }
 0x109   : > { %v456_v21 = vadd.f32 1.0, %v660_v10 }
 0x10a   : > { %671 = vrcp.f32 %v455_v16 }
 0x10f   : > { %v662_v11 = vpop.eup %661 }
 0x110   : > { %v465_v19 = vmul.f32 %v662_v11, %v656_v8 }
 0x111   : > { %v664_v13 = vpop.eup %663 }
 0x113   : > { %v666_v14 = vpop.eup %665 }
 0x114   : > { %v668_v17 = vpop.eup %667  ;;  %v463_v18 = vmul.f32 %v666_v14, %v461_v12 }
 0x115   : > { %v670_v20 = vpop.eup %669  ;;  %v466_v24 = vmul.f32 %v668_v17, %v664_v13 }
 0x116   : > { %v467_v22 = vadd.f32 %v465_v19, %v463_v18  ;;  %v464_v23 = vmul.f32 %v670_v20, %v462_v15 }
 0x117   : > { %v672_v26 = vpop.eup %671 }
 0x118   : > { %673 = vtanh.f32 %v467_v22  ;;  %v468_v25 = vadd.f32 %v466_v24, %v464_v23  ;;  %475 = vst [vmem:[%s257_s22] sm:$0xff] %v467_v22 }
 0x119   : > { %675 = vrcp.f32 %v456_v21 }
 0x11a   : > { %677 = vtanh.f32 %v468_v25  ;;  %476 = vst [vmem:[%s257_s22 + $0x8] sm:$0xff] %v468_v25 }
 0x125   : > { %v674_v27 = vpop.eup %673 }
 0x126   : > { %v676_v28 = vpop.eup %675  ;;  %v471_v29 = vmul.f32 %v674_v27, %v672_v26 }
 0x127   : > { %v678_v30 = vpop.eup %677 }
 0x128   : > { %473 = vst [vmem:[%s252_s25] sm:$0xff] %v471_v29  ;;  %v472_v31 = vmul.f32 %v678_v30, %v676_v28 }
 0x12a   : > { %474 = vst [vmem:[%s252_s25 + $0x8] sm:$0xff] %v472_v31 }
 0x12b PF: > { %s16_s18 = sadd.s32 1, %s685_s18  }
 0x12c   : > { %p13_p4 = scmp.ge.s32.totalorder %s16_s18, 4  }
 0x12e   :  { %15 = sbr.rel (!%p13_p4) target bundleno = 1 (0x1), region = 81 }

</bundles_post_ra>
